<compile_context>
chip_gen: v7x
topology: tpu7x:2x2x1
jax: 0.10.0
libtpu: 0.0.40
codegen_flags: <defaults>
</compile_context>

<pallas_src>
import functools

import jax
import jax.numpy as jnp
from jax.experimental import pallas as pl
from jax.experimental.pallas import tpu as pltpu

DIMS = [192, 175, 125, 100]       # logical feature sizes (PyTorch module)
DIMS_PAD = [192, 256, 128, 128]   # lane-padded feature sizes used by kernels
BN_EPS = 1e-5


def _round_up(x, m):
    return (x + m - 1) // m * m


# --------------------------------------------------------------------------- #
# Kernels
# --------------------------------------------------------------------------- #
def _matmul_stats_kernel(x_ref, w_ref, z_ref, stats_ref, *, compute_dtype):
    """z = x @ W ; accumulate per-feature sum / sum-of-squares of z."""
    i = pl.program_id(0)
    z = jnp.dot(x_ref[...].astype(compute_dtype), w_ref[...],
                preferred_element_type=jnp.float32)
    z_ref[...] = z.astype(z_ref.dtype)

    @pl.when(i == 0)
    def _():
        stats_ref[...] = jnp.zeros_like(stats_ref)

    stats_ref[...] += jnp.concatenate(
        [jnp.sum(z, axis=0, keepdims=True),
         jnp.sum(z * z, axis=0, keepdims=True)], axis=0)


def _bn_relu_matmul_stats_kernel(z_ref, s_ref, t_ref, w_ref, zn_ref, stats_ref,
                                 *, compute_dtype, tile_rows, n_valid, n_padded):
    """h = relu(z*s + t) (BN of previous layer, fused affine); zero padded batch
    rows; z_next = h @ W ; accumulate stats of z_next."""
    i = pl.program_id(0)
    h = jnp.maximum(z_ref[...].astype(jnp.float32) * s_ref[...] + t_ref[...], 0.0)

    if n_padded > n_valid:
        # Zero the padded batch rows so they contribute exactly 0 to the next
        # layer's batch statistics.
        row = i * tile_rows + jax.lax.broadcasted_iota(jnp.int32, (tile_rows, 1), 0)
        h = jnp.where(row < n_valid, h, 0.0)

    zn = jnp.dot(h.astype(compute_dtype), w_ref[...],
                 preferred_element_type=jnp.float32)
    zn_ref[...] = zn.astype(zn_ref.dtype)

    @pl.when(i == 0)
    def _():
        stats_ref[...] = jnp.zeros_like(stats_ref)

    stats_ref[...] += jnp.concatenate(
        [jnp.sum(zn, axis=0, keepdims=True),
         jnp.sum(zn * zn, axis=0, keepdims=True)], axis=0)


def _bn_relu_kernel(z_ref, s_ref, t_ref, o_ref):
    """Final BN (fused affine) + ReLU."""
    o_ref[...] = jnp.maximum(
        z_ref[...].astype(jnp.float32) * s_ref[...] + t_ref[...], 0.0
    ).astype(o_ref.dtype)


# --------------------------------------------------------------------------- #
# Wrapper
# --------------------------------------------------------------------------- #
def _pad_params(params, compute_dtype):
    """Zero-pad weights / BN affine params to the lane-padded feature sizes."""
    padded = []
    for i, p in enumerate(params):
        fi, fo = DIMS[i], DIMS[i + 1]
        fip, fop = DIMS_PAD[i], DIMS_PAD[i + 1]
        w = jnp.zeros((fip, fop), jnp.float32).at[:fi, :fo].set(p["w"])
        w = w.astype(compute_dtype)
        gamma = jnp.ones((1, fop), jnp.float32).at[:, :fo].set(p["gamma"])
        beta = jnp.zeros((1, fop), jnp.float32).at[:, :fo].set(p["beta"])
        # NOTE: p["b"] (Linear bias) is intentionally not used by the kernels:
        # the BN mean subtraction cancels it exactly.
        padded.append((w, gamma, beta))
    return padded


def fc_encoder_forward(x, params, *, compute_dtype=jnp.float32, tile_rows=256):
    """x: (N, 192, 1) float32 -> (N, 100, 1) float32."""
    x2d = jnp.squeeze(x, axis=-1) if x.ndim == 3 else x
    n = x2d.shape[0]
    assert x2d.shape[1] == DIMS[0]

    tb = min(_round_up(tile_rows, 8), _round_up(n, 8))
    n_pad = _round_up(n, tb)
    num_tiles = n_pad // tb

    cp_acc = pltpu.CompilerParams(dimension_semantics=("arbitrary",))
    cp_par = pltpu.CompilerParams(dimension_semantics=("parallel",))

    # Zero-pad the batch: padded rows are exact zeros -> 0 contribution to
    # layer-1 statistics.
    x_p = jnp.zeros((n_pad, DIMS[0]), jnp.float32).at[:n, :].set(
        x2d.astype(jnp.float32))

    padded = _pad_params(params, compute_dtype)

    def scale_shift(stats, gamma, beta):
        mu = stats[0:1, :] / n
        var = jnp.maximum(stats[1:2, :] / n - mu * mu, 0.0)
        s = gamma * jax.lax.rsqrt(var + BN_EPS)
        return s, beta - mu * s

    # ---- layer 1: z1 = x @ W1  (+ stats) ------------------------------------
    w1, g1, be1 = padded[0]
    f_in, f_out = DIMS_PAD[0], DIMS_PAD[1]
    z_prev, st_prev = pl.pallas_call(
        functools.partial(_matmul_stats_kernel, compute_dtype=compute_dtype),
        grid=(num_tiles,),
        in_specs=[pl.BlockSpec((tb, f_in), lambda i: (i, 0)),
                  pl.BlockSpec((f_in, f_out), lambda i: (0, 0))],
        out_specs=[pl.BlockSpec((tb, f_out), lambda i: (i, 0)),
                   pl.BlockSpec((2, f_out), lambda i: (0, 0))],
        out_shape=[jax.ShapeDtypeStruct((n_pad, f_out), compute_dtype),
                   jax.ShapeDtypeStruct((2, f_out), jnp.float32)],
        compiler_params=cp_acc,
    )(x_p, w1)
    g_prev, be_prev = g1, be1

    # ---- layers 2..3: BN+ReLU(prev) fused with next matmul (+ stats) --------
    for layer in (1, 2):
        w, g, be = padded[layer]
        f_in, f_out = DIMS_PAD[layer], DIMS_PAD[layer + 1]
        s_prev, t_prev = scale_shift(st_prev, g_prev, be_prev)
        z_prev, st_prev = pl.pallas_call(
            functools.partial(_bn_relu_matmul_stats_kernel,
                              compute_dtype=compute_dtype,
                              tile_rows=tb, n_valid=n, n_padded=n_pad),
            grid=(num_tiles,),
            in_specs=[pl.BlockSpec((tb, f_in), lambda i: (i, 0)),
                      pl.BlockSpec((1, f_in), lambda i: (0, 0)),
                      pl.BlockSpec((1, f_in), lambda i: (0, 0)),
                      pl.BlockSpec((f_in, f_out), lambda i: (0, 0))],
            out_specs=[pl.BlockSpec((tb, f_out), lambda i: (i, 0)),
                       pl.BlockSpec((2, f_out), lambda i: (0, 0))],
            out_shape=[jax.ShapeDtypeStruct((n_pad, f_out), compute_dtype),
                       jax.ShapeDtypeStruct((2, f_out), jnp.float32)],
            compiler_params=cp_acc,
        )(z_prev, s_prev, t_prev, w)
        g_prev, be_prev = g, be

    # ---- final BN + ReLU -----------------------------------------------------
    f_out = DIMS_PAD[3]
    s3, t3 = scale_shift(st_prev, g_prev, be_prev)
    h3 = pl.pallas_call(
        _bn_relu_kernel,
        grid=(num_tiles,),
        in_specs=[pl.BlockSpec((tb, f_out), lambda i: (i, 0)),
                  pl.BlockSpec((1, f_out), lambda i: (0, 0)),
                  pl.BlockSpec((1, f_out), lambda i: (0, 0))],
        out_specs=pl.BlockSpec((tb, f_out), lambda i: (i, 0)),
        out_shape=jax.ShapeDtypeStruct((n_pad, f_out), jnp.float32),
        compiler_params=cp_par,
    )(z_prev, s3, t3)

    return h3[:n, :DIMS[-1]][..., None]                  # (N, 100, 1)


# --------------------------------------------------------------------------- #
# Parameters + pure-JAX reference (matches the PyTorch module semantics)
# --------------------------------------------------------------------------- #
def init_params(key):
    """PyTorch-default-like init: Linear W,b ~ U(-1/sqrt(fan_in), 1/sqrt(fan_in));
    BN gamma=1, beta=0. W is stored pre-transposed as (F_in, F_out)."""
    params = []
    for i in range(3):
        fan_in, fan_out = DIMS[i], DIMS[i + 1]
        key, kw, kb = jax.random.split(key, 3)
        bound = 1.0 / jnp.sqrt(jnp.float32(fan_in))
        w = jax.random.uniform(kw, (fan_in, fan_out), jnp.float32,
                               minval=-bound, maxval=bound)
        b = jax.random.uniform(kb, (1, fan_out), jnp.float32,
                               minval=-bound, maxval=bound)
        gamma = jnp.ones((1, fan_out), jnp.float32)
        beta = jnp.zeros((1, fan_out), jnp.float32)
        params.append({"w": w, "b": b, "gamma": gamma, "beta": beta})
    return params


def _reference_forward(x, params):
    """Pure-JAX reference: Linear(+bias) -> train-mode BN (biased var) -> ReLU."""
    h = jnp.squeeze(x, axis=-1)
    for p in params:
        z = h @ p["w"] + p["b"]
        mu = jnp.mean(z, axis=0, keepdims=True)
        var = jnp.mean((z - mu) ** 2, axis=0, keepdims=True)
        z = (z - mu) / jnp.sqrt(var + BN_EPS)
        h = jnp.maximum(p["gamma"] * z + p["beta"], 0.0)
    return h[..., None]


if __name__ == "__main__":
    key = jax.random.PRNGKey(0)
    key, kx = jax.random.split(key)

    batch = 200                               # not a tile multiple -> exercises masking
    x = jax.random.normal(kx, (batch, DIMS[0], 1), dtype=jnp.float32)
    params = init_params(key)

    ref = _reference_forward(x, params)

    # f32 path (strict check), tile_rows=64 -> 4 batch tiles.
    out = jax.block_until_ready(
        fc_encoder_forward(x, params, compute_dtype=jnp.float32, tile_rows=64))
    assert out.shape == (batch, DIMS[-1], 1), out.shape
    max_err = float(jnp.max(jnp.abs(out - ref)))
    assert jnp.allclose(out, ref, atol=1e-3, rtol=1e-3), max_err

    # bf16 MXU path (v6e/v7x fast path) — sanity check with loose tolerance.
    out_bf16 = jax.block_until_ready(
        fc_encoder_forward(x, params, compute_dtype=jnp.bfloat16, tile_rows=64))
    assert out_bf16.shape == (batch, DIMS[-1], 1), out_bf16.shape
    assert bool(jnp.all(jnp.isfinite(out_bf16)))
    assert float(jnp.max(jnp.abs(out_bf16 - ref))) < 0.5

    print("KERNEL_OK")
</pallas_src>

<mosaic_0001>
module attributes {stable_mosaic.version = 11 : i64} {
  func.func @_matmul_stats_kernel(%arg0: i32, %arg1: memref<64x192xf32, #tpu.memory_space<vmem>>, %arg2: memref<192x256xf32, #tpu.memory_space<vmem>>, %arg3: memref<64x256xf32, #tpu.memory_space<vmem>>, %arg4: memref<2x256xf32, #tpu.memory_space<vmem>>) attributes {dimension_semantics = [#tpu.dimension_semantics<arbitrary>], iteration_bounds = array<i64: 4>, scalar_prefetch = 0 : i64, scratch_operands = 0 : i64, tpu.core_type = #tpu.core_type<tc>, window_params = [{transform_indices = @transform_0, window_bounds = array<i64: 64, 192>}, {pipeline_mode = #tpu.pipeline_mode<synchronous>, transform_indices = @transform_1, window_bounds = array<i64: 192, 256>}, {transform_indices = @transform_2, window_bounds = array<i64: 64, 256>}, {pipeline_mode = #tpu.pipeline_mode<synchronous>, transform_indices = @transform_3, window_bounds = array<i64: 2, 256>}]} {
    %c0 = arith.constant 0 : index
    %c0_0 = arith.constant 0 : index
    %0 = vector.load %arg1[%c0, %c0_0] : memref<64x192xf32, #tpu.memory_space<vmem>>, vector<64x192xf32>
    %c0_1 = arith.constant 0 : index
    %c0_2 = arith.constant 0 : index
    %1 = vector.load %arg2[%c0_1, %c0_2] : memref<192x256xf32, #tpu.memory_space<vmem>>, vector<192x256xf32>
    %cst = arith.constant dense<0.000000e+00> : vector<64x256xf32>
    %2 = tpu.matmul %0, %1, %cst {dimension_numbers = #tpu.dot_dimension_numbers<[1], [0], [0], [1], [0, 0, 1, 1], [], []>} : vector<64x192xf32>, vector<192x256xf32>, vector<64x256xf32> -> vector<64x256xf32>
    %c0_3 = arith.constant 0 : index
    %c0_4 = arith.constant 0 : index
    %3 = vector.load %arg3[%c0_3, %c0_4] : memref<64x256xf32, #tpu.memory_space<vmem>>, vector<64x256xf32>
    tpu.vector_store %arg3[%c0_3, %c0_4], %2 {strides = array<i32>} : memref<64x256xf32, #tpu.memory_space<vmem>>, vector<64x256xf32>,
    %c0_i32 = arith.constant 0 : i32
    %4 = arith.cmpi eq, %arg0, %c0_i32 : i32
    %5 = arith.extui %4 : i1 to i32
    %c0_i32_5 = arith.constant 0 : i32
    %6 = arith.cmpi ne, %5, %c0_i32_5 : i32
    scf.if %6 {
      %cst_12 = arith.constant 0.000000e+00 : f32
      %16 = vector.broadcast %cst_12 : f32 to vector<2x256xf32>
      %c0_13 = arith.constant 0 : index
      %c0_14 = arith.constant 0 : index
      %17 = vector.load %arg4[%c0_13, %c0_14] : memref<2x256xf32, #tpu.memory_space<vmem>>, vector<2x256xf32>
      tpu.vector_store %arg4[%c0_13, %c0_14], %16 {strides = array<i32>} : memref<2x256xf32, #tpu.memory_space<vmem>>, vector<2x256xf32>,
    } else {
    }
    %c0_6 = arith.constant 0 : index
    %c0_7 = arith.constant 0 : index
    %7 = vector.load %arg4[%c0_6, %c0_7] : memref<2x256xf32, #tpu.memory_space<vmem>>, vector<2x256xf32>
    %cst_8 = arith.constant dense<0.000000e+00> : vector<256xf32>
    %8 = vector.multi_reduction <add>, %2, %cst_8 [0] : vector<64x256xf32> to vector<256xf32>
    %9 = vector.shape_cast %8 : vector<256xf32> to vector<1x256xf32>
    %10 = arith.mulf %2, %2 : vector<64x256xf32>
    %cst_9 = arith.constant dense<0.000000e+00> : vector<256xf32>
    %11 = vector.multi_reduction <add>, %10, %cst_9 [0] : vector<64x256xf32> to vector<256xf32>
    %12 = vector.shape_cast %11 : vector<256xf32> to vector<1x256xf32>
    %13 = tpu.concatenate %9, %12 in 0 : vector<1x256xf32>, vector<1x256xf32> -> vector<2x256xf32>
    %14 = arith.addf %7, %13 : vector<2x256xf32>
    %c0_10 = arith.constant 0 : index
    %c0_11 = arith.constant 0 : index
    %15 = vector.load %arg4[%c0_10, %c0_11] : memref<2x256xf32, #tpu.memory_space<vmem>>, vector<2x256xf32>
    tpu.vector_store %arg4[%c0_10, %c0_11], %14 {strides = array<i32>} : memref<2x256xf32, #tpu.memory_space<vmem>>, vector<2x256xf32>,
    return
  }
  func.func @transform_0(%arg0: i32) -> (i32, i32) {
    %c0_i32 = arith.constant 0 : i32
    %c0_i32_0 = arith.constant 0 : i32
    return %arg0, %c0_i32 : i32, i32
  }
  func.func @transform_1(%arg0: i32) -> (i32, i32) {
    %c0_i32 = arith.constant 0 : i32
    %c0_i32_0 = arith.constant 0 : i32
    %c0_i32_1 = arith.constant 0 : i32
    return %c0_i32, %c0_i32_0 : i32, i32
  }
  func.func @transform_2(%arg0: i32) -> (i32, i32) {
    %c0_i32 = arith.constant 0 : i32
    %c0_i32_0 = arith.constant 0 : i32
    return %arg0, %c0_i32 : i32, i32
  }
  func.func @transform_3(%arg0: i32) -> (i32, i32) {
    %c0_i32 = arith.constant 0 : i32
    %c0_i32_0 = arith.constant 0 : i32
    %c0_i32_1 = arith.constant 0 : i32
    return %c0_i32, %c0_i32_0 : i32, i32
  }
}

</mosaic_0001>

<bundles_post_ra>
// kernel: tpu_custom_call.1
= control target key start
LH: loop header
LB: loop body
LE: loop exit
PB: predicated region body
PF: predicated region fallthrough
CT: control target
= control target key end

     0   :  { %9 = vsyncpa [#allocation3], 0  ;;  %s1225_s0 = inlined_call_operand.vmem [shape: f32[256,192], index: 0, kind: input, shape index: {}]   ;;  %s1226_s1 = inlined_call_operand.vmem [shape: f32[192,256], index: 1, kind: input, shape index: {}]   ;;  %s1227_s2 = inlined_call_operand.hbm [shape: f32[256,256], index: 2, kind: output, shape index: {0}]   ;;  %s1228_s3 = inlined_call_operand.hbm [shape: f32[2,256], index: 3, kind: output, shape index: {1}]  }
   0x1   :  { %11 = vsyncpa [#allocation3 + $0x1], 0 }
   0x2   :  { %12 = vsyncpa [#allocation5], 0  ;;  %s851_s12 = smov 0   ;;  %s853_s13 = smov 0  }
   0x3   :  { %s855_s14 = smov 0   ;;  %s857_s15 = smov 0  }
   0x4 LB: > { %s872_s16 = sadd.s32 4294967295, %s823_s15   ;;  %s581_s17 = sadd.s32 4294967294, %s823_s15   ;;  %s823_s15 = sphi %s857_s15, %s1235_s15   ;;  %s819_s14 = sphi %s855_s14, %s1234_s14   ;;  %s815_s13 = sphi %s853_s13, %s1233_s13   ;;  %s811_s12 = sphi %s851_s12, %s1232_s12  }
   0x5   : > { %s876_s18 = sadd.s32 1, %s823_s15   ;;  %s72_s19 = sadd.s32 1, %s819_s14 }
   0x6   : > { %s69_s20 = ssub.s32 %s823_s15, %s876_s18  ;;  %p82_p0 = scmp.ne.s32.totalorder %s819_s14, %s815_s13 }
   0x7   : > { %p70_p1 = scmp.eq.s32.totalorder %s69_s20, 0  ;;  %p83_p2 = scmp.eq.s32.totalorder %s872_s16, 3 }
   0x8   : > { %p88_p3 = scmp.ne.s32.totalorder %s815_s13, %s811_s12  ;;  %p89_p4 = scmp.eq.s32.totalorder %s581_s17, 3 }
   0x9   : > { %s887_s21 = scalar_select %p70_p1, %s819_s14, %s72_s19  }
   0xa   : > { %p891_p5 = por %p83_p2, %p82_p0  ;;  %p895_p6 = por %p89_p4, %p88_p3 }
   0xb   : > { %p584_p7 = scmp.ge.s32.totalorder %s823_s15, 1  ;;  %p141_p8 = scmp.lt.s32.totalorder %s823_s15, 5 }
   0xd   : > { %p142_p9 = pnand %p584_p7, %p141_p8 }
   0xe   : > { %v191_v0 = vld [vmem:[%s1226_s1 + $0x8] sm:$0xff] (!%p142_p9)  ;;  %v193_v1 = vld [vmem:[%s1226_s1 + $0x18] sm:$0xff] (!%p142_p9)  ;;  %v190_v2 = vld [vmem:[%s1226_s1] sm:$0xff] (!%p142_p9)  ;;  %s586_s30 = sshll.u32 (!%p142_p9), %s872_s16, 3  ;;  %vm238_vm0 = vcmask (!%p142_p9), 523264   ;;  %s161_s19 = sand.u32 (!%p142_p9), 1, %s815_s13  }
   0xf   : > { %145 = sbr.rel (%p142_p9) target bundleno = 362 (0x16a), region = 28  ;;  %v609_v3 = vpack.c.bf16 (!%p142_p9), %v193_v1, %v191_v0  ;;  %v192_v4 = vld [vmem:[%s1226_s1 + $0x10] sm:$0xff] (!%p142_p9)  ;;  %v195_v5 = vld [vmem:[%s1226_s1 + $0x28] sm:$0xff] (!%p142_p9)  ;;  %v197_v6 = vld [vmem:[%s1226_s1 + $0x38] sm:$0xff] (!%p142_p9)  ;;  %p929_p10 = scmp.lt.s32.totalorder (!%p142_p9), %s586_s30, 31 }
  0x10   : > { %v611_v7 = vpack.c.bf16 (!%p142_p9), %v192_v4, %v190_v2  ;;  %v613_v8 = vpack.c.bf16 (!%p142_p9), %v197_v6, %v195_v5  ;;  %v194_v9 = vld [vmem:[%s1226_s1 + $0x20] sm:$0xff] (!%p142_p9)  ;;  %v196_v10 = vld [vmem:[%s1226_s1 + $0x30] sm:$0xff] (!%p142_p9)  ;;  %v199_v11 = vld [vmem:[%s1226_s1 + $0x48] sm:$0xff] (!%p142_p9)  ;;  %s585_s20 = sshll.u32 (!%p142_p9), %s161_s19, 7  ;;  %p597_p11 = scmp.ne.s32.totalorder (!%p142_p9), %s872_s16, 0 }
  0x11   : > { %610 = vmatprep.subr.bf16.mxu0 (!%p142_p9), %v609_v3  ;;  %657 = vmatprep.subr.bf16.mxu1 (!%p142_p9), %v609_v3  ;;  %v201_v12 = vld [vmem:[%s1226_s1 + $0x58] sm:$0xff] (!%p142_p9)  ;;  %v615_v13 = vpack.c.bf16 (!%p142_p9), %v196_v10, %v194_v9  ;;  %v198_v15 = vld [vmem:[%s1226_s1 + $0x40] sm:$0xff] (!%p142_p9)  ;;  %v200_v16 = vld [vmem:[%s1226_s1 + $0x50] sm:$0xff] (!%p142_p9)  ;;  %s1086_s24 = scalar_lea.vmem (!%p142_p9), [#allocation2], %s585_s20 }
  0x12   : > { %612 = vmatpush1.bf16.msra.mxu0 (!%p142_p9), %v611_v7  ;;  %669 = vmatpush1.bf16.msra.mxu1 (!%p142_p9), %v611_v7  ;;  %v617_v14 = vpack.c.bf16 (!%p142_p9), %v201_v12, %v199_v11  ;;  %v203_v17 = vld [vmem:[%s1226_s1 + $0x68] sm:$0xff] (!%p142_p9)  ;;  %v205_v18 = vld [vmem:[%s1226_s1 + $0x78] sm:$0xff] (!%p142_p9)  ;;  %v619_v19 = vpack.c.bf16 (!%p142_p9), %v200_v16, %v198_v15  ;;  %v202_v21 = vld [vmem:[%s1226_s1 + $0x60] sm:$0xff] (!%p142_p9) }
  0x13   : > { %614 = vmatprep.subr.bf16.mxu0 (!%p142_p9), %v613_v8  ;;  %658 = vmatprep.subr.bf16.mxu1 (!%p142_p9), %v613_v8  ;;  %v621_v20 = vpack.c.bf16 (!%p142_p9), %v205_v18, %v203_v17  ;;  %v204_v22 = vld [vmem:[%s1226_s1 + $0x70] sm:$0xff] (!%p142_p9)  ;;  %v207_v23 = vld [vmem:[%s1226_s1 + $0x88] sm:$0xff] (!%p142_p9)  ;;  %v209_v24 = vld [vmem:[%s1226_s1 + $0x98] sm:$0xff] (!%p142_p9) }
  0x14   : > { %v623_v25 = vpack.c.bf16 (!%p142_p9), %v204_v22, %v202_v21  ;;  %v625_v26 = vpack.c.bf16 (!%p142_p9), %v209_v24, %v207_v23  ;;  %v206_v27 = vld [vmem:[%s1226_s1 + $0x80] sm:$0xff] (!%p142_p9)  ;;  %v208_v28 = vld [vmem:[%s1226_s1 + $0x90] sm:$0xff] (!%p142_p9)  ;;  %v211_v29 = vld [vmem:[%s1226_s1 + $0xa8] sm:$0xff] (!%p142_p9) }
  0x15   : > { %v213_v30 = vld [vmem:[%s1226_s1 + $0xb8] sm:$0xff] (!%p142_p9)  ;;  %v627_v31 = vpack.c.bf16 (!%p142_p9), %v208_v28, %v206_v27  ;;  %v210_v35 = vld [vmem:[%s1226_s1 + $0xa0] sm:$0xff] (!%p142_p9)  ;;  %v212_v36 = vld [vmem:[%s1226_s1 + $0xb0] sm:$0xff] (!%p142_p9) }
  0x16   : > { %s1237_s30 = smov (!%p929_p10, %s586_s30), 31  ;;  %616 = vmatpush1.bf16.msra.mxu0 %v615_v13  ;;  %670 = vmatpush1.bf16.msra.mxu1 %v615_v13  ;;  %v629_v34 = vpack.c.bf16 %v213_v30, %v211_v29  ;;  %v215_v37 = vld [vmem:[%s1226_s1 + $0xc8] sm:$0xff]  ;;  %v217_v38 = vld [vmem:[%s1226_s1 + $0xd8] sm:$0xff]  ;;  %v631_v39 = vpack.c.bf16 %v212_v36, %v210_v35  ;;  %v214_v41 = vld [vmem:[%s1226_s1 + $0xc0] sm:$0xff] }
  0x17   : > { %618 = vmatprep.subr.bf16.mxu0 %v617_v14  ;;  %659 = vmatprep.subr.bf16.mxu1 %v617_v14  ;;  %s606_s27 = sshll.u32 %s1237_s30, 4  ;;  %v633_v40 = vpack.c.bf16 %v217_v38, %v215_v37  ;;  %v216_v42 = vld [vmem:[%s1226_s1 + $0xd0] sm:$0xff]  ;;  %v219_v43 = vld [vmem:[%s1226_s1 + $0xe8] sm:$0xff]  ;;  %v221_v44 = vld [vmem:[%s1226_s1 + $0xf8] sm:$0xff] }
  0x18   : > { %s971_s8 = scalar_lea.vmem %s1225_s0, %s606_s27  ;;  %v635_v45 = vpack.c.bf16 %v216_v42, %v214_v41  ;;  %v637_v46 = vpack.c.bf16 %v221_v44, %v219_v43  ;;  %v218_v47 = vld [vmem:[%s1226_s1 + $0xe0] sm:$0xff]  ;;  %v220_v48 = vld [vmem:[%s1226_s1 + $0xf0] sm:$0xff]  ;;  %v223_v49 = vld [vmem:[%s1226_s1 + $0x108] sm:$0xff] }
  0x19   : > { %v175_v32 = vld [vmem:[%s971_s8 + $0x8] sm:$0xff]  ;;  %v225_v50 = vld [vmem:[%s1226_s1 + $0x118] sm:$0xff]  ;;  %v639_v51 = vpack.c.bf16 %v220_v48, %v218_v47  ;;  %v222_v53 = vld [vmem:[%s1226_s1 + $0x100] sm:$0xff] }
  0x1a   : > { %620 = vmatpush1.bf16.msra.mxu0 %v619_v19  ;;  %671 = vmatpush1.bf16.msra.mxu1 %v619_v19  ;;  %v183_v33 = vld [vmem:[%s971_s8 + $0x48] sm:$0xff]  ;;  %v641_v52 = vpack.c.bf16 %v225_v50, %v223_v49  ;;  %v224_v54 = vld [vmem:[%s1226_s1 + $0x110] sm:$0xff]  ;;  %v229_v56 = vld [vmem:[%s1226_s1 + $0x138] sm:$0xff] }
  0x1b   : > { %622 = vmatprep.subr.bf16.mxu0 %v621_v20  ;;  %660 = vmatprep.subr.bf16.mxu1 %v621_v20  ;;  %v227_v55 = vld [vmem:[%s1226_s1 + $0x128] sm:$0xff]  ;;  %v643_v57 = vpack.c.bf16 %v224_v54, %v222_v53  ;;  %v226_v59 = vld [vmem:[%s1226_s1 + $0x120] sm:$0xff]  ;;  %v228_v60 = vld [vmem:[%s1226_s1 + $0x130] sm:$0xff] }
  0x1c   : > { %589 = vmatprep.mubr.msk.f32.mxu0 %vm238_vm0, %v175_v32  ;;  %593 = vmatprep.mubr.msk.f32.mxu1 %vm238_vm0, %v183_v33  ;;  %v645_v58 = vpack.c.bf16 %v229_v56, %v227_v55  ;;  %v231_v61 = vld [vmem:[%s1226_s1 + $0x148] sm:$0xff]  ;;  %v233_v62 = vld [vmem:[%s1226_s1 + $0x158] sm:$0xff]  ;;  %v647_v63 = vpack.c.bf16 %v228_v60, %v226_v59  ;;  %v230_v1 = vld [vmem:[%s1226_s1 + $0x140] sm:$0xff] }
  0x1d   : > { %v649_v0 = vpack.c.bf16 %v233_v62, %v231_v61  ;;  %v232_v2 = vld [vmem:[%s1226_s1 + $0x150] sm:$0xff]  ;;  %v235_v3 = vld [vmem:[%s1226_s1 + $0x168] sm:$0xff]  ;;  %v237_v4 = vld [vmem:[%s1226_s1 + $0x178] sm:$0xff] }
  0x1e   : > { %624 = vmatpush1.bf16.msra.mxu0 %v623_v25  ;;  %672 = vmatpush1.bf16.msra.mxu1 %v623_v25  ;;  %v651_v5 = vpack.c.bf16 %v232_v2, %v230_v1  ;;  %v653_v6 = vpack.c.bf16 %v237_v4, %v235_v3  ;;  %v234_v7 = vld [vmem:[%s1226_s1 + $0x160] sm:$0xff]  ;;  %v236_v8 = vld [vmem:[%s1226_s1 + $0x170] sm:$0xff]  ;;  %v177_v12 = vld [vmem:[%s971_s8 + $0x18] sm:$0xff] }
  0x1f   : > { %626 = vmatprep.subr.bf16.mxu0 %v625_v26  ;;  %661 = vmatprep.subr.bf16.mxu1 %v625_v26  ;;  %v655_v9 = vpack.c.bf16 %v236_v8, %v234_v7  ;;  %v174_v10 = vld [vmem:[%s971_s8] sm:$0xff]  ;;  %v185_v13 = vld [vmem:[%s971_s8 + $0x58] sm:$0xff]  ;;  %v176_v14 = vld [vmem:[%s971_s8 + $0x10] sm:$0xff] }
  0x20   : > { %v182_v11 = vld [vmem:[%s971_s8 + $0x40] sm:$0xff]  ;;  %v184_v15 = vld [vmem:[%s971_s8 + $0x50] sm:$0xff]  ;;  %v179_v16 = vld [vmem:[%s971_s8 + $0x28] sm:$0xff] }
  0x21   : > { %v187_v17 = vld [vmem:[%s971_s8 + $0x68] sm:$0xff]  ;;  %v178_v18 = vld [vmem:[%s971_s8 + $0x20] sm:$0xff]  ;;  %v181_v20 = vld [vmem:[%s971_s8 + $0x38] sm:$0xff] }
  0x22   : > { %628 = vmatpush1.bf16.msra.mxu0 %v627_v31  ;;  %673 = vmatpush1.bf16.msra.mxu1 %v627_v31  ;;  %v186_v19 = vld [vmem:[%s971_s8 + $0x60] sm:$0xff]  ;;  %v189_v21 = vld [vmem:[%s971_s8 + $0x78] sm:$0xff]  ;;  %v180_v22 = vld [vmem:[%s971_s8 + $0x30] sm:$0xff] }
  0x23   : > { %630 = vmatprep.subr.bf16.mxu0 %v629_v34  ;;  %662 = vmatprep.subr.bf16.mxu1 %v629_v34  ;;  %v188_v23 = vld [vmem:[%s971_s8 + $0x70] sm:$0xff] }
  0x26   : > { %632 = vmatpush1.bf16.msra.mxu0 %v631_v39  ;;  %674 = vmatpush1.bf16.msra.mxu1 %v631_v39 }
  0x27   : > { %634 = vmatprep.subr.bf16.mxu0 %v633_v40  ;;  %663 = vmatprep.subr.bf16.mxu1 %v633_v40  ;;  %v825_v40 = vmov (!%p597_p11), 0.0  }
  0x28   : > { %396 = vst [vmem:[#allocation4] sm:$0xf] (!%p597_p11), %v825_v40 }
  0x2a   : > { %636 = vmatpush1.bf16.msra.mxu0 %v635_v45  ;;  %675 = vmatpush1.bf16.msra.mxu1 %v635_v45 }
  0x2b   : > { %638 = vmatprep.subr.bf16.mxu0 %v637_v46  ;;  %664 = vmatprep.subr.bf16.mxu1 %v637_v46 }
  0x2e   : > { %640 = vmatpush1.bf16.msra.mxu0 %v639_v51  ;;  %676 = vmatpush1.bf16.msra.mxu1 %v639_v51 }
  0x2f   : > { %642 = vmatprep.subr.bf16.mxu0 %v641_v52  ;;  %665 = vmatprep.subr.bf16.mxu1 %v641_v52 }
  0x32   : > { %644 = vmatpush1.bf16.msra.mxu0 %v643_v57  ;;  %677 = vmatpush1.bf16.msra.mxu1 %v643_v57 }
  0x33   : > { %646 = vmatprep.subr.bf16.mxu0 %v645_v58  ;;  %666 = vmatprep.subr.bf16.mxu1 %v645_v58 }
  0x36   : > { %648 = vmatpush1.bf16.msra.mxu0 %v647_v63  ;;  %678 = vmatpush1.bf16.msra.mxu1 %v647_v63 }
  0x37   : > { %650 = vmatprep.subr.bf16.mxu0 %v649_v0  ;;  %667 = vmatprep.subr.bf16.mxu1 %v649_v0 }
  0x3a   : > { %652 = vmatpush1.bf16.msra.mxu0 %v651_v5  ;;  %679 = vmatpush1.bf16.msra.mxu1 %v651_v5 }
  0x3b   : > { %654 = vmatprep.subr.bf16.mxu0 %v653_v6  ;;  %668 = vmatprep.subr.bf16.mxu1 %v653_v6 }
  0x3e   : > { %656 = vmatpush1.bf16.msra.mxu0 %v655_v9  ;;  %680 = vmatpush1.bf16.msra.mxu1 %v655_v9 }
  0x41   : > { %328 = vmatmul.mubr.f32.vlgmr.msra.gmra.mrb[0].mxu0 %v174_v10  ;;  %352 = vmatmul.mubr.f32.vlgmr.msra.gmra.mrb[0].mxu1 %v182_v11 }
  0x42   : > { %590 = vmatprep.mubr.msk.f32.mxu0 %vm238_vm0, %v177_v12  ;;  %594 = vmatprep.mubr.msk.f32.mxu1 %vm238_vm0, %v185_v13 }
  0x45   : > { %334 = vmatmul.mubr.f32.gmra.mrb[2].mxu0 %v176_v14  ;;  %358 = vmatmul.mubr.f32.gmra.mrb[2].mxu1 %v184_v15 }
  0x46   : > { %591 = vmatprep.mubr.msk.f32.mxu0 %vm238_vm0, %v179_v16  ;;  %595 = vmatprep.mubr.msk.f32.mxu1 %vm238_vm0, %v187_v17 }
  0x49   : > { %340 = vmatmul.mubr.f32.gmra.mrb[4].mxu0 %v178_v18  ;;  %364 = vmatmul.mubr.f32.gmra.mrb[4].mxu1 %v186_v19 }
  0x4a   : > { %592 = vmatprep.mubr.msk.f32.mxu0 %vm238_vm0, %v181_v20  ;;  %596 = vmatprep.mubr.msk.f32.mxu1 %vm238_vm0, %v189_v21 }
  0x4d   : > { %346 = vmatmul.mubr.f32.gmra.mrb[6].mxu0 %v180_v22  ;;  %370 = vmatmul.mubr.f32.gmra.mrb[6].mxu1 %v188_v23 }
 0x114   : > { %v329_v24 = vpop.f32.mrb[0].mxu0  ;;  %v1084_v25 = vpop.f32.mrb[0].mxu1 }
 0x115   : > { %376 = vst [vmem:[%s1086_s24] sm:$0xff] %v329_v24  ;;  %384 = vst [vmem:[%s1086_s24 + $0x40] sm:$0xff] %v1084_v25  ;;  %v331_v26 = vpop.f32.mrb[1].mxu0  ;;  %v1091_v27 = vpop.f32.mrb[1].mxu1 }
 0x116   : > { %377 = vst [vmem:[%s1086_s24 + $0x8] sm:$0xff] %v331_v26  ;;  %385 = vst [vmem:[%s1086_s24 + $0x48] sm:$0xff] %v1091_v27 }
 0x118   : > { %v335_v28 = vpop.f32.mrb[2].mxu0  ;;  %v1096_v29 = vpop.f32.mrb[2].mxu1 }
 0x119   : > { %378 = vst [vmem:[%s1086_s24 + $0x10] sm:$0xff] %v335_v28  ;;  %386 = vst [vmem:[%s1086_s24 + $0x50] sm:$0xff] %v1096_v29  ;;  %v337_v30 = vpop.f32.mrb[3].mxu0  ;;  %v1101_v31 = vpop.f32.mrb[3].mxu1 }
 0x11a   : > { %379 = vst [vmem:[%s1086_s24 + $0x18] sm:$0xff] %v337_v30  ;;  %387 = vst [vmem:[%s1086_s24 + $0x58] sm:$0xff] %v1101_v31 }
 0x11c   : > { %v341_v32 = vpop.f32.mrb[4].mxu0  ;;  %v1106_v33 = vpop.f32.mrb[4].mxu1  ;;  %395 = sbr.rel (%p597_p11) target bundleno = 291 (0x123), region = 32 }
 0x11d   : > { %380 = vst [vmem:[%s1086_s24 + $0x20] sm:$0xff] %v341_v32  ;;  %388 = vst [vmem:[%s1086_s24 + $0x60] sm:$0xff] %v1106_v33  ;;  %v343_v34 = vpop.f32.mrb[5].mxu0  ;;  %v1111_v35 = vpop.f32.mrb[5].mxu1 }
 0x11e   : > { %381 = vst [vmem:[%s1086_s24 + $0x28] sm:$0xff] %v343_v34  ;;  %389 = vst [vmem:[%s1086_s24 + $0x68] sm:$0xff] %v1111_v35 }
 0x120   : > { %v347_v36 = vpop.f32.mrb[6].mxu0  ;;  %v1116_v37 = vpop.f32.mrb[6].mxu1 }
 0x121   : > { %382 = vst [vmem:[%s1086_s24 + $0x30] sm:$0xff] %v347_v36  ;;  %390 = vst [vmem:[%s1086_s24 + $0x70] sm:$0xff] %v1116_v37  ;;  %v349_v38 = vpop.f32.mrb[7].mxu0  ;;  %v1121_v39 = vpop.f32.mrb[7].mxu1 }
 0x122   : > { %383 = vst [vmem:[%s1086_s24 + $0x38] sm:$0xff] %v349_v38  ;;  %391 = vst [vmem:[%s1086_s24 + $0x78] sm:$0xff] %v1121_v39 }
 0x123 PF: > { %v398_v41 = vadd.f32 %v335_v28, %v329_v24  ;;  %v411_v42 = vadd.f32 %v337_v30, %v331_v26  ;;  %s608_s8 = sshll.u32 %s872_s16, 11  ;;  %v424_v43 = vmul.f32 %v329_v24, %v329_v24  ;;  %v425_v44 = vmul.f32 %v331_v26, %v331_v26  ;;  %s497_s28 = sshll.u32 %s1086_s24, 4  ;;  %s1134_s28 = int_to_ptr.vmem [resolvable:$true] %s497_s28 }
 0x124   : > { %v426_v45 = vmul.f32 %v335_v28, %v335_v28  ;;  %v427_v46 = vmul.f32 %v337_v30, %v337_v30  ;;  %s1131_s27 = scalar_lea.hbm %s1227_s2, %s608_s8  ;;  %v428_v49 = vmul.f32 %v341_v32, %v341_v32  ;;  %v429_v50 = vmul.f32 %v343_v34, %v343_v34  ;;  %s1138_s29 = scalar_lea.sflag [#allocation3], %s161_s19 }
 0x125   : > { %v399_v47 = vadd.f32 %v398_v41, %v341_v32  ;;  %v412_v48 = vadd.f32 %v411_v42, %v343_v34  ;;  %s731_s4 = scalar_lea.vmem %s1134_s28, 2048  ;;  %s826_s5 = smov [#allocation2]  }
 0x126   : > { %p732_p12 = scmp.ne.s32.totalorder %s1134_s28, %s731_s4  ;;  %s735_s6 = sshll.u32 %s826_s5, 4  ;;  %s736_s6 = int_to_ptr.vmem [resolvable:$false] %s735_s6 }
 0x127   : > { %v400_v51 = vadd.f32 %v399_v47, %v347_v36  ;;  %v413_v52 = vadd.f32 %v412_v48, %v349_v38  ;;  %s737_s7 = scalar_lea.vmem %s736_s6, 4096  ;;  %p738_p1 = scmp.lt.s32.totalorder %s1134_s28, %s736_s6 }
 0x128   : > { %p733_p13 = pnand %p732_p12, %p891_p5  ;;  %p739_p3 = scmp.lt.s32.totalorder %s737_s7, %s731_s4 }
 0x12a   : > { %p734_p0 = pneg %p733_p13  ;;  %p740_p4 = por %p739_p3, %p738_p1 }
 0x12c   : > { %p741_p7 = pnand %p740_p4, %p734_p0 }
 0x12e   : > { %744 = shalt.err (!%p741_p7)
}
 0x12f   : > { %s745_s30 = scalar_lea.hbm %s1131_s27, 2048  ;;  %s749_s11 = scalar_lea.hbm %s1227_s2, 8192 }
 0x130   : > { %p746_p8 = scmp.ne.s32.totalorder %s1131_s27, %s745_s30  ;;  %p750_p11 = scmp.lt.u32.totalorder %s1131_s27, %s1227_s2 }
 0x131   : > { %p751_p12 = scmp.lt.u32.totalorder %s749_s11, %s745_s30  ;;  %p753_p0 = scmp.lt.u32.totalorder %s745_s30, %s1131_s27 }
 0x132   : > { %p747_p9 = pnand %p746_p8, %p891_p5 }
 0x133   : > { %p752_p13 = por %p751_p12, %p750_p11 }
 0x134   : > { %p748_p10 = pneg %p747_p9 }
 0x135   : > { %p754_p1 = por %p753_p0, %p752_p13 }
 0x137   : > { %p755_p3 = pnand %p754_p1, %p748_p10 }
 0x139   : > { %758 = shalt.err (!%p755_p3)
}
 0x13a   : > { %s827_s20 = smov 256   ;;  %s828_s24 = smov 16   ;;  %v430_v53 = vmul.f32 %v347_v36, %v347_v36  ;;  %v431_v54 = vmul.f32 %v349_v38, %v349_v38  ;;  %v440_v55 = vadd.f32 %v426_v45, %v424_v43  ;;  %v453_v56 = vadd.f32 %v427_v46, %v425_v44 }
 0x13b   : > { %681 = dma.vmem_to_hbm [thread:$0]  (%p891_p5), %s1134_s28, 2048, %s1131_s27, %s1138_s29, %s827_s20, %s827_s20, %s828_s24   ;;  %v401_v57 = vadd.f32 %v400_v51, %v1084_v25  ;;  %v414_v58 = vadd.f32 %v413_v52, %v1091_v27  ;;  %v432_v59 = vmul.f32 %v1084_v25, %v1084_v25  ;;  %v433_v60 = vmul.f32 %v1091_v27, %v1091_v27 }
 0x13c   : > { %v441_v61 = vadd.f32 %v440_v55, %v428_v49  ;;  %v454_v62 = vadd.f32 %v453_v56, %v429_v50  ;;  %v434_v1 = vmul.f32 %v1096_v29, %v1096_v29  ;;  %v435_v2 = vmul.f32 %v1101_v31, %v1101_v31  ;;  %s830_s22 = smov [#allocation4]  }
 0x13d   : > { %v402_v63 = vadd.f32 %v401_v57, %v1096_v29  ;;  %v415_v0 = vadd.f32 %v414_v58, %v1101_v31  ;;  %v436_v7 = vmul.f32 %v1106_v33, %v1106_v33  ;;  %v437_v8 = vmul.f32 %v1111_v35, %v1111_v35  ;;  %s511_s8 = sshll.u32 %s830_s22, 4  ;;  %s512_s8 = int_to_ptr.vmem [resolvable:$true] %s511_s8 }
 0x13e   : > { %v442_v3 = vadd.f32 %v441_v61, %v430_v53  ;;  %v455_v4 = vadd.f32 %v454_v62, %v431_v54  ;;  %v438_v13 = vmul.f32 %v1116_v37, %v1116_v37  ;;  %v439_v14 = vmul.f32 %v1121_v39, %v1121_v39  ;;  %v397_v54 = vld [vmem:[#allocation4] sm:$0xf]  ;;  %s759_s25 = scalar_lea.vmem %s512_s8, 64  ;;  %p766_p8 = scmp.lt.s32.totalorder %s512_s8, %s512_s8 }
 0x13f   : > { %v403_v5 = vadd.f32 %v402_v63, %v1106_v33  ;;  %v416_v6 = vadd.f32 %v415_v0, %v1111_v35  ;;  %v829_v33 = vmov 1983009808   ;;  %v475_v35 = vlaneseq  ;;  %p760_p5 = scmp.ne.s32.totalorder %s512_s8, %s759_s25  ;;  %p767_p9 = scmp.lt.s32.totalorder %s759_s25, %s759_s25 }
 0x140   : > { %v443_v9 = vadd.f32 %v442_v3, %v432_v59  ;;  %v456_v10 = vadd.f32 %v455_v4, %v433_v60  ;;  %v473_v34 = vunpack.c.l.s4 %v829_v33  ;;  %vm466_vm1 = vcmask 1040384  }
 0x141   : > { %v404_v11 = vadd.f32 %v403_v5, %v1116_v37  ;;  %v417_v12 = vadd.f32 %v416_v6, %v1121_v39  ;;  %v476_v43 = vshrl.u32 %v475_v35, 7  ;;  %p761_p4 = pnand %p760_p5, %p83_p2  ;;  %p768_p10 = por %p767_p9, %p766_p8 }
 0x142   : > { %v444_v15 = vadd.f32 %v443_v9, %v434_v1  ;;  %v457_v16 = vadd.f32 %v456_v10, %v435_v2  ;;  %v474_v42 = vunpack.c.0.s8 %v473_v34 }
 0x143   : > { %v405_v17 = vrot.slane %v404_v11, 4  ;;  %v418_v18 = vrot.slane %v417_v12, 4  ;;  %p762_p7 = pneg %p761_p4 }
 0x144   : > { %v445_v19 = vadd.f32 %v444_v15, %v436_v7  ;;  %v458_v20 = vadd.f32 %v457_v16, %v437_v8  ;;  %v477_v50 = vsub.s32 %v474_v42, %v476_v43 }
 0x145   : > { %v406_v21 = vadd.f32 %v405_v17, %v404_v11  ;;  %v419_v22 = vadd.f32 %v418_v18, %v417_v12  ;;  %p769_p11 = pnand %p768_p10, %p762_p7 }
 0x146   : > { %v446_v23 = vadd.f32 %v445_v19, %v438_v13  ;;  %v459_v24 = vadd.f32 %v458_v20, %v439_v14 }
 0x147   : > { %v407_v25 = vrot.slane %v406_v21, 2  ;;  %v420_v26 = vrot.slane %v419_v22, 2 }
 0x148   : > { %v447_v27 = vrot.slane %v446_v23, 4  ;;  %v460_v28 = vrot.slane %v459_v24, 4 }
 0x149   : > { %v408_v29 = vadd.f32 %v407_v25, %v406_v21  ;;  %v421_v30 = vadd.f32 %v420_v26, %v419_v22 }
 0x14a   : > { %v448_v31 = vadd.f32 %v447_v27, %v446_v23  ;;  %v461_v32 = vadd.f32 %v460_v28, %v459_v24 }
 0x14b   : > { %v409_v36 = vrot.slane %v408_v29, 1  ;;  %v422_v37 = vrot.slane %v421_v30, 1 }
 0x14c   : > { %v449_v38 = vrot.slane %v448_v31, 2  ;;  %v462_v39 = vrot.slane %v461_v32, 2 }
 0x14d   : > { %v410_v44 = vadd.f32 %v409_v36, %v408_v29  ;;  %v423_v45 = vadd.f32 %v422_v37, %v421_v30 }
 0x14e   : > { %v450_v40 = vadd.f32 %v449_v38, %v448_v31  ;;  %v463_v41 = vadd.f32 %v462_v39, %v461_v32 }
 0x150   : > { %v451_v46 = vrot.slane %v450_v40, 1  ;;  %v464_v47 = vrot.slane %v463_v41, 1 }
 0x152   : > { %v452_v48 = vadd.f32 %v451_v46, %v450_v40  ;;  %v465_v49 = vadd.f32 %v464_v47, %v463_v41 }
 0x154   : > { %v467_v51 = vsel %vm466_vm1, %v410_v44, %v452_v48  ;;  %v468_v52 = vsel %vm466_vm1, %v423_v45, %v465_v49 }
 0x155   : > { %v471_v53 = vcombine.low %v467_v51, %v468_v52 }
 0x157   : > { %v478_v55 = vrot.slane %v471_v53, %v477_v50 }
 0x159   : > { %v480_v56 = vadd.f32 %v478_v55, %v397_v54 }
 0x15b   : > { %481 = vst [vmem:[#allocation4] sm:$0xf] %v480_v56 }
 0x15c   : > { %772 = shalt.err (!%p769_p11)
}
 0x15d   : > { %s773_s28 = scalar_lea.hbm %s1228_s3, 64 }
 0x15e   : > { %p774_p12 = scmp.ne.s32.totalorder %s1228_s3, %s773_s28  ;;  %p779_p1 = scmp.lt.u32.totalorder %s773_s28, %s1228_s3 }
 0x160   : > { %p775_p13 = pnand %p774_p12, %p83_p2 }
 0x162   : > { %p776_p0 = pneg %p775_p13 }
 0x164   : > { %p781_p3 = pnand %p779_p1, %p776_p0 }
 0x166   : > { %784 = shalt.err (!%p781_p3)
}
 0x167   : > { %683 = dma.vmem_to_hbm [thread:$0]  (%p83_p2), %s512_s8, 64, %s1228_s3, [#allocation5]  }
 0x168   : > { %802 = dma.done.wait (%p83_p2), [#allocation5], 64  }
 0x169   : > { %804 = vsyncadd (%p83_p2), [#allocation5], 4294967232 }
 0x16a PF: > { %p693_p5 = scmp.ge.s32.totalorder %s823_s15, 2  ;;  %s527_s9 = sand.u32 1, %s811_s12  }
 0x16b   : > { %s528_s10 = scalar_lea.sflag [#allocation3], %s527_s9 }
 0x16c   : > { %p688_p4 = pnand %p693_p5, %p895_p6 }
 0x16e   : > { %806 = dma.done.wait (!%p688_p4), %s528_s10, 2048  }
 0x16f   : > { %808 = vsyncadd (!%p688_p4), %s528_s10, 4294965248  ;;  %p15_p7 = scmp.ge.s32.totalorder %s876_s18, 6   ;;  %s1232_s12 = smov %s815_s13 }
 0x170   : > { %s1233_s13 = smov %s819_s14  ;;  %s1234_s14 = smov %s887_s21 }
 0x171   : > { %s1235_s15 = smov %s876_s18  ;;  %17 = sbr.rel (!%p15_p7) target bundleno = 4 (0x4), region = 75 }
 0x178   :  { %533 = vsyncpa [#allocation3], 1 }
 0x179   :  { %535 = vsyncpa [#allocation3 + $0x1], 1 }
 0x17a   :  { %536 = vsyncpa [#allocation5], 1 }

</bundles_post_ra>
